<compile_context>
chip_gen: v6e
topology: v6e:2x2x1
jax: 0.10.0
libtpu: 0.0.40
codegen_flags: <defaults>
</compile_context>

<pallas_src>
import functools

import jax
import jax.numpy as jnp
from jax.experimental import pallas as pl
from jax.experimental.pallas import tpu as pltpu


_SUBLANE = 8
_LANE = 128


def _round_up(x, m):
    return (x + m - 1) // m * m


def _vmem_params():
    """(double-buffer byte budget, vmem_limit_bytes) sized per TPU generation."""
    try:
        cap = int(pltpu.get_tpu_info().vmem_capacity_bytes)
    except Exception:
        cap = 64 << 20                       # conservative (v7x per-TC) fallback
    limit = min(cap * 3 // 4, 96 << 20)      # ~96 MiB on v5e/v6e, ~48 MiB on v7x
    return limit // 2, limit


def _pick_tile_b(batch, bytes_per_row, budget, cap_rows):
    """Largest batch tile (multiple of 8, <= cap_rows) fitting the VMEM budget."""
    tile = min(_round_up(batch, _SUBLANE), cap_rows)
    while tile > _SUBLANE and tile * bytes_per_row > budget:
        tile = _round_up(tile // 2, _SUBLANE)
    return tile


# -----------------------------------------------------------------------------
# Early phase (update < es):
#   loss = -(log_softmax(outputs) * targets).sum() / batch_size
# Each grid step reduces its whole batch tile to a single masked scalar and
# writes one (8,128) partial block; the wrapper sums partials and divides by B.
# -----------------------------------------------------------------------------
def _make_early_kernel(n_rows, tile_b):
    def kernel(logits_ref, tgt_ref, part_ref):
        x = logits_ref[...].astype(jnp.float32)                       # [T, C]
        t = tgt_ref[...].astype(jnp.float32)
        m = jnp.max(x, axis=-1, keepdims=True)
        shifted = x - m
        lse = jnp.log(jnp.sum(jnp.exp(shifted), axis=-1, keepdims=True))
        row = jnp.sum((shifted - lse) * t, axis=-1, keepdims=True)    # [T, 1]
        row_id = pl.program_id(0) * tile_b + jax.lax.broadcasted_iota(
            jnp.int32, row.shape, 0)
        tot = jnp.sum(jnp.where(row_id < n_rows, row, 0.0))           # scalar
        lane = jax.lax.broadcasted_iota(jnp.int32, (_SUBLANE, _LANE), 1)
        part_ref[0] = jnp.where(lane == 0, tot, 0.0)

    return kernel


@jax.jit
def _sat_early_loss(outputs, targets):
    B, C = outputs.shape
    budget, limit = _vmem_params()
    bytes_per_row = 2 * C * (outputs.dtype.itemsize + targets.dtype.itemsize)
    tile_b = _pick_tile_b(B, bytes_per_row, budget, cap_rows=1024)
    nt = (B + tile_b - 1) // tile_b

    parts = pl.pallas_call(
        _make_early_kernel(B, tile_b),
        out_shape=jax.ShapeDtypeStruct((nt, _SUBLANE, _LANE), jnp.float32),
        grid=(nt,),
        in_specs=[
            pl.BlockSpec((tile_b, C), lambda i: (i, 0)),
            pl.BlockSpec((tile_b, C), lambda i: (i, 0)),
        ],
        out_specs=pl.BlockSpec((1, _SUBLANE, _LANE), lambda i: (i, 0, 0)),
        compiler_params=pltpu.CompilerParams(
            dimension_semantics=("parallel",),
            vmem_limit_bytes=limit,
        ),
    )(outputs, targets)
    return -jnp.sum(parts[:, 0, 0]) / B


# -----------------------------------------------------------------------------
# Self-adaptive phase (update >= es), fully fused:
#   rows     = soft_labels[index]                      (in-kernel DMA gather)
#   new_rows = alpha * rows + (1 - alpha) * softmax(outputs)
#   soft_labels[index] = new_rows                      (in-kernel DMA scatter,
#                                                       aliased output)
#   weight = max(new_rows, -1)
#   loss   = -(weight * (log_softmax(outputs) * new_rows).sum(-1)).sum()
#            / weight.sum()
# -----------------------------------------------------------------------------
def _make_late_kernel(alpha, n_rows, tile_b):
    alpha = float(alpha)

    def kernel(logits_ref, soft_in_hbm, idx_ref, soft_out_hbm, part_ref,
               soft_buf, sems):
        base = pl.program_id(0) * tile_b

        # ---- gather this tile's soft-label rows from the HBM table ----
        # All copies share one DMA semaphore; every copy is the same row shape,
        # so one wait per issued copy balances the semaphore.
        @pl.loop(0, tile_b)
        def _gather(r):
            g = jnp.minimum(base + r, n_rows - 1)   # clamp ragged tail (masked later)
            pltpu.make_async_copy(
                soft_in_hbm.at[idx_ref[g]], soft_buf.at[r], sems.at[0]).start()

        @pl.loop(0, tile_b)
        def _gather_wait(r):
            pltpu.make_async_copy(
                soft_in_hbm.at[0], soft_buf.at[0], sems.at[0]).wait()

        # ---- EMA update + weighted-loss partials ----
        x = logits_ref[...].astype(jnp.float32)      # [T, C]
        s = soft_buf[...]                            # [T, C] gathered soft rows
        m = jnp.max(x, axis=-1, keepdims=True)
        shifted = x - m
        e = jnp.exp(shifted)
        sumexp = jnp.sum(e, axis=-1, keepdims=True)
        log_sm = shifted - jnp.log(sumexp)           # exact log_softmax
        conf = e / sumexp                            # exact softmax -> EMA table
        new_s = alpha * s + (1.0 - alpha) * conf
        w = jnp.max(new_s, axis=-1, keepdims=True)                   # [T, 1]
        pr = jnp.sum(log_sm * new_s, axis=-1, keepdims=True)         # [T, 1]

        row_id = base + jax.lax.broadcasted_iota(jnp.int32, w.shape, 0)
        valid = row_id < n_rows                      # mask ragged-tail rows
        num_t = jnp.sum(jnp.where(valid, w * pr, 0.0))
        den_t = jnp.sum(jnp.where(valid, w, 0.0))

        lane = jax.lax.broadcasted_iota(jnp.int32, (_SUBLANE, _LANE), 1)
        part_ref[0] = jnp.where(lane == 0, num_t,
                                jnp.where(lane == 1, den_t, 0.0))

        # ---- scatter the updated rows back in place (aliased output) ----
        soft_buf[...] = new_s

        @pl.loop(0, tile_b)
        def _scatter(r):
            g = base + r

            @pl.when(g < n_rows)
            def _():
                pltpu.make_async_copy(
                    soft_buf.at[r], soft_out_hbm.at[idx_ref[g]],
                    sems.at[1]).start()

        @pl.loop(0, tile_b)
        def _scatter_wait(r):
            @pl.when(base + r < n_rows)
            def _():
                pltpu.make_async_copy(
                    soft_buf.at[0], soft_out_hbm.at[0], sems.at[1]).wait()

    return kernel


@functools.partial(jax.jit, static_argnums=(3,), donate_argnums=(1,))
def _sat_late_step(outputs, soft_labels, index, alpha):
    B, C = outputs.shape
    L, _ = soft_labels.shape
    budget, limit = _vmem_params()
    bytes_per_row = 2 * C * outputs.dtype.itemsize + C * 4   # logits dbuf + soft scratch
    tile_b = _pick_tile_b(B, bytes_per_row, budget, cap_rows=256)
    nt = (B + tile_b - 1) // tile_b

    soft_out, parts = pl.pallas_call(
        _make_late_kernel(alpha, B, tile_b),
        out_shape=(
            jax.ShapeDtypeStruct((L, C), soft_labels.dtype),
            jax.ShapeDtypeStruct((nt, _SUBLANE, _LANE), jnp.float32),
        ),
        grid=(nt,),
        in_specs=[
            pl.BlockSpec((tile_b, C), lambda i: (i, 0)),        # logits (pipelined)
            pl.BlockSpec(memory_space=pl.ANY),                  # soft-label table (HBM)
            pl.BlockSpec(memory_space=pltpu.MemorySpace.SMEM),  # row indices
        ],
        out_specs=(
            pl.BlockSpec(memory_space=pl.ANY),                  # updated table (aliased)
            pl.BlockSpec((1, _SUBLANE, _LANE), lambda i: (i, 0, 0)),
        ),
        scratch_shapes=[
            pltpu.VMEM((tile_b, C), jnp.float32),
            pltpu.SemaphoreType.DMA((2,)),
        ],
        input_output_aliases={1: 0},      # soft_labels -> soft_out, in-place
        compiler_params=pltpu.CompilerParams(
            dimension_semantics=("parallel",),
            vmem_limit_bytes=limit,
        ),
    )(outputs, soft_labels, index.astype(jnp.int32))

    loss = -jnp.sum(parts[:, 0, 0]) / jnp.sum(parts[:, 0, 1])
    return soft_out, loss


# -----------------------------------------------------------------------------
# Stateful wrapper mirroring the PyTorch module's forward semantics.
# -----------------------------------------------------------------------------
class SelfAdaptiveTraining:
    def __init__(self, length, class_num, es=500, alpha=0.9):
        self.es = es
        self.alpha = float(alpha)
        # TODO(synk): optionally store the EMA table in bf16 (halves table
        # bandwidth) once long-horizon EMA accuracy is validated vs f32.
        self.soft_labels = jnp.zeros((length, class_num), jnp.float32)
        self.update = 0

    def __call__(self, outputs, targets, index):
        self.update += 1
        if self.update < self.es:
            if self.update == 1:               # matches the PyTorch reference
                self.soft_labels = self.soft_labels.at[index].set(
                    targets.astype(self.soft_labels.dtype))
            return _sat_early_loss(outputs, targets)
        self.soft_labels, loss = _sat_late_step(
            outputs, self.soft_labels, index, self.alpha)
        return loss


if __name__ == "__main__":
    key = jax.random.PRNGKey(0)
    length, class_num, batch = 32, 128, 8

    k1, k2, k3 = jax.random.split(key, 3)
    outputs = jax.random.normal(k1, (batch, class_num), dtype=jnp.float32)
    labels = jax.random.randint(k2, (batch,), 0, class_num)
    targets = jax.nn.one_hot(labels, class_num, dtype=jnp.float32)
    index = jax.random.permutation(k3, length)[:batch].astype(jnp.int32)

    # Pure-JAX references for the two phases of the PyTorch forward.
    def ref_early(o, t):
        return -(jax.nn.log_softmax(o, -1) * t).sum() / o.shape[0]

    def ref_late(o, soft_rows, alpha):
        ls = jax.nn.log_softmax(o, -1)
        conf = jax.nn.softmax(o, -1)
        new_s = alpha * soft_rows + (1.0 - alpha) * conf
        w = new_s.max(-1)
        return new_s, -(w * (ls * new_s).sum(-1)).sum() / w.sum()

    # Early phase (update < es): soft-target cross-entropy.
    sat_early = SelfAdaptiveTraining(length, class_num, es=500, alpha=0.9)
    loss_early = sat_early(outputs, targets, index)
    jax.block_until_ready(loss_early)
    assert jnp.allclose(loss_early, ref_early(outputs, targets),
                        rtol=1e-3, atol=1e-5)

    # Self-adaptive phase (update >= es): fused in-place EMA + weighted loss.
    sat_late = SelfAdaptiveTraining(length, class_num, es=1, alpha=0.9)
    sat_late.soft_labels = sat_late.soft_labels.at[index].set(targets)
    loss_late = sat_late(outputs, targets, index)
    jax.block_until_ready(loss_late)
    jax.block_until_ready(sat_late.soft_labels)

    ref_new, ref_loss = ref_late(outputs, targets, 0.9)
    assert jnp.allclose(loss_late, ref_loss, rtol=1e-3, atol=1e-5)
    assert jnp.allclose(sat_late.soft_labels[index], ref_new,
                        rtol=1e-3, atol=1e-5)
    # Rows outside `index` must be untouched by the in-kernel scatter.
    touched = jnp.zeros((length,), bool).at[index].set(True)
    untouched_max = jnp.where(touched[:, None], 0.0,
                              jnp.abs(sat_late.soft_labels)).max()
    assert float(untouched_max) == 0.0

    print("KERNEL_OK")
</pallas_src>

<mosaic_0001>
module attributes {stable_mosaic.version = 11 : i64} {
  func.func @kernel(%arg0: i32, %arg1: memref<8x128xf32, #tpu.memory_space<vmem>>, %arg2: memref<8x128xf32, #tpu.memory_space<vmem>>, %arg3: memref<1x8x128xf32, #tpu.memory_space<vmem>>) attributes {dimension_semantics = [#tpu.dimension_semantics<parallel>], iteration_bounds = array<i64: 1>, scalar_prefetch = 0 : i64, scratch_operands = 0 : i64, tpu.core_type = #tpu.core_type<tc>, window_params = [{transform_indices = @transform_0, window_bounds = array<i64: 8, 128>}, {transform_indices = @transform_1, window_bounds = array<i64: 8, 128>}, {transform_indices = @transform_2, window_bounds = array<i64: 1, 8, 128>}]} {
    %c0 = arith.constant 0 : index
    %c0_0 = arith.constant 0 : index
    %0 = vector.load %arg1[%c0, %c0_0] : memref<8x128xf32, #tpu.memory_space<vmem>>, vector<8x128xf32>
    %c0_1 = arith.constant 0 : index
    %c0_2 = arith.constant 0 : index
    %1 = vector.load %arg2[%c0_1, %c0_2] : memref<8x128xf32, #tpu.memory_space<vmem>>, vector<8x128xf32>
    %cst = arith.constant dense<0xFF800000> : vector<8xf32>
    %2 = vector.multi_reduction <maximumf>, %0, %cst [1] : vector<8x128xf32> to vector<8xf32>
    %3 = vector.shape_cast %2 : vector<8xf32> to vector<8x1xf32>
    %4 = vector.broadcast %3 : vector<8x1xf32> to vector<8x128xf32>
    %5 = arith.subf %0, %4 : vector<8x128xf32>
    %6 = math.exp %5 : vector<8x128xf32>
    %cst_3 = arith.constant dense<0.000000e+00> : vector<8xf32>
    %7 = vector.multi_reduction <add>, %6, %cst_3 [1] : vector<8x128xf32> to vector<8xf32>
    %8 = vector.shape_cast %7 : vector<8xf32> to vector<8x1xf32>
    %9 = math.log %8 : vector<8x1xf32>
    %10 = vector.broadcast %9 : vector<8x1xf32> to vector<8x128xf32>
    %11 = arith.subf %5, %10 : vector<8x128xf32>
    %12 = arith.mulf %11, %1 : vector<8x128xf32>
    %cst_4 = arith.constant dense<0.000000e+00> : vector<8xf32>
    %13 = vector.multi_reduction <add>, %12, %cst_4 [1] : vector<8x128xf32> to vector<8xf32>
    %14 = vector.shape_cast %13 : vector<8xf32> to vector<8x1xf32>
    %c8_i32 = arith.constant 8 : i32
    %15 = arith.muli %arg0, %c8_i32 : i32
    %16 = tpu.iota {dimensions = array<i32: 0>} : vector<8x1xi32>
    %17 = vector.broadcast %15 : i32 to vector<8x1xi32>
    %18 = arith.addi %17, %16 : vector<8x1xi32>
    %c8_i32_5 = arith.constant 8 : i32
    %19 = vector.broadcast %c8_i32_5 : i32 to vector<8x1xi32>
    %20 = arith.cmpi slt, %18, %19 : vector<8x1xi32>
    %cst_6 = arith.constant 0.000000e+00 : f32
    %21 = vector.broadcast %cst_6 : f32 to vector<8x1xf32>
    %22 = arith.select %20, %14, %21 : vector<8x1xi1>, vector<8x1xf32>
    %23 = vector.shape_cast %22 : vector<8x1xf32> to vector<1x8x1xf32>
    %cst_7 = arith.constant dense<0.000000e+00> : vector<1xf32>
    %24 = vector.multi_reduction <add>, %23, %cst_7 [1, 2] : vector<1x8x1xf32> to vector<1xf32>
    %25 = vector.shape_cast %24 : vector<1xf32> to vector<1x1x1xf32>
    %26 = vector.extract %25[0, 0, 0] : f32 from vector<1x1x1xf32>
    %27 = tpu.iota {dimensions = array<i32: 1>} : vector<8x128xi32>
    %c0_i32 = arith.constant 0 : i32
    %28 = vector.broadcast %c0_i32 : i32 to vector<8x128xi32>
    %29 = arith.cmpi eq, %27, %28 : vector<8x128xi32>
    %cst_8 = arith.constant 0.000000e+00 : f32
    %30 = vector.broadcast %26 : f32 to vector<8x128xf32>
    %31 = vector.broadcast %cst_8 : f32 to vector<8x128xf32>
    %32 = arith.select %29, %30, %31 : vector<8x128xi1>, vector<8x128xf32>
    %c0_9 = arith.constant 0 : index
    %c0_10 = arith.constant 0 : index
    %c0_11 = arith.constant 0 : index
    %33 = vector.load %arg3[%c0_9, %c0_10, %c0_11] : memref<1x8x128xf32, #tpu.memory_space<vmem>>, vector<1x8x128xf32>
    %34 = vector.shape_cast %33 : vector<1x8x128xf32> to vector<8x128xf32>
    %35 = vector.shape_cast %32 : vector<8x128xf32> to vector<1x8x128xf32>
    tpu.vector_store %arg3[%c0_9, %c0_10, %c0_11], %35 {strides = array<i32>} : memref<1x8x128xf32, #tpu.memory_space<vmem>>, vector<1x8x128xf32>,
    return
  }
  func.func @transform_0(%arg0: i32) -> (i32, i32) {
    %c0_i32 = arith.constant 0 : i32
    %c0_i32_0 = arith.constant 0 : i32
    return %arg0, %c0_i32 : i32, i32
  }
  func.func @transform_1(%arg0: i32) -> (i32, i32) {
    %c0_i32 = arith.constant 0 : i32
    %c0_i32_0 = arith.constant 0 : i32
    return %arg0, %c0_i32 : i32, i32
  }
  func.func @transform_2(%arg0: i32) -> (i32, i32, i32) {
    %c0_i32 = arith.constant 0 : i32
    %c0_i32_0 = arith.constant 0 : i32
    %c0_i32_1 = arith.constant 0 : i32
    return %arg0, %c0_i32, %c0_i32_0 : i32, i32, i32
  }
}

</mosaic_0001>

<bundles_post_ra>
// kernel: _sat_early_loss.1
= control target key start
LH: loop header
LB: loop body
LE: loop exit
PB: predicated region body
PF: predicated region fallthrough
CT: control target
= control target key end

     0   :  { %7 = vsyncpa [#allocation3], 0  ;;  %s158_s0 = inlined_call_operand.hbm [shape: f32[8,128], index: 0, kind: input, shape index: {}]   ;;  %s159_s1 = inlined_call_operand.hbm [shape: f32[8,128], index: 1, kind: input, shape index: {}]   ;;  %s160_s2 = inlined_call_operand.vmem [shape: f32[1,8,128], index: 2, kind: output, shape index: {}]  }
   0x1   :  { %8 = vsyncpa [#allocation5], 0  ;;  %s132_s9 = smov [#allocation2]   ;;  %s133_s11 = smov [#allocation4]  }
   0x2   :  { %s15_s10 = sshll.u32 %s132_s9, 4  ;;  %s25_s12 = sshll.u32 %s133_s11, 4  ;;  %s16_s10 = int_to_ptr.vmem [resolvable:$true] %s15_s10  ;;  %s26_s12 = int_to_ptr.vmem [resolvable:$true] %s25_s12 }
   0x3   :  { %s96_s13 = scalar_lea.vmem %s16_s10, 128  ;;  %p101_p1 = scmp.lt.s32.totalorder %s16_s10, %s16_s10 }
   0x4   :  { %p97_p0 = scmp.ne.s32.totalorder %s16_s10, %s96_s13  ;;  %p102_p2 = scmp.lt.s32.totalorder %s96_s13, %s96_s13 }
   0x6   :  { %p103_p3 = por %p102_p2, %p101_p1 }
   0x8   :  { %p104_p4 = pnand %p103_p3, %p97_p0 }
   0xa   :  { %107 = shalt.err (!%p104_p4)
}
   0xb   :  { %18 = dma.hbm_to_vmem [thread:$0]  %s158_s0, 128, %s16_s10, [#allocation3]  }
   0xc   :  { %s116_s16 = scalar_lea.vmem %s26_s12, 128  ;;  %p121_p6 = scmp.lt.s32.totalorder %s26_s12, %s26_s12 }
   0xd   :  { %p117_p5 = scmp.ne.s32.totalorder %s26_s12, %s116_s16  ;;  %p122_p7 = scmp.lt.s32.totalorder %s116_s16, %s116_s16 }
   0xf   :  { %p123_p8 = por %p122_p7, %p121_p6 }
  0x11   :  { %p124_p9 = pnand %p123_p8, %p117_p5 }
  0x13   :  { %127 = shalt.err (!%p124_p9)
}
  0x14   :  { %28 = dma.hbm_to_vmem [thread:$0]  %s159_s1, 128, %s26_s12, [#allocation5]  }
  0x15   :  { %128 = dma.done.wait [#allocation3], 128  }
  0x16   :  { %129 = vsyncadd [#allocation3], 4294967168 }
  0x17   :  { %130 = dma.done.wait [#allocation5], 128  }
  0x18   :  { %131 = vsyncadd [#allocation5], 4294967168  ;;  %v35_v0 = vld [vmem:[#allocation2] sm:$0xff]  ;;  %v36_v8 = vld [vmem:[#allocation4] sm:$0xff]  ;;  %vm57_vm0 = vcmask 7168   ;;  %v68_v20 = vlaneseq }
  0x19   :  { %37 = vmax.xlane.f32.xlu0 %v35_v0 }
  0x1a   :  { %v69_v21 = vand.u32 127, %v68_v20 }
  0x1c   :  { %vm70_vm1 = vcmp.eq.s32.totalorder %v69_v21, 0 }
  0xa2   :  { %v38_v1 = vpop.xlane.xlu0 %37 }
  0xa3   :  { %v39_v2 = vsub.f32 %v35_v0, %v38_v1 }
  0xa5   :  { %v40_v3 = vmul.f32 1.442695, %v39_v2 }
  0xa7   :  { %84 = vpow2.f32 %v40_v3 }
  0xb4   :  { %v85_v4 = vpop.eup %84 }
  0xb5   :  { %42 = vadd.xlane.f32.xlu0 %v85_v4 }
 0x13e   :  { %v43_v5 = vpop.xlane.xlu0 %42 }
 0x13f   :  { %86 = vlog2.f32 %v43_v5 }
 0x14c   :  { %v87_v6 = vpop.eup %86 }
 0x14d   :  { %v45_v7 = vmul.f32 0.6931472, %v87_v6 }
 0x14f   :  { %v46_v9 = vsub.f32 %v39_v2, %v45_v7 }
 0x151   :  { %v47_v10 = vmul.f32 %v46_v9, %v36_v8 }
 0x153   :  { %48 = vadd.xlane.f32.xlu1 %v47_v10 }
 0x1dc   :  { %v49_v11 = vpop.xlane.xlu1 %48 }
 0x1dd   :  { %v58_v12 = vsel %vm57_vm0, %v49_v11, 0.0 }
 0x1de   :  { %59 = vadd.xlane.f32.xlu1 %v58_v12 }
 0x267   :  { %v60_v13 = vpop.xlane.xlu1 %59 }
 0x268   :  { %v61_v14 = vrot.slane %v60_v13, 4 }
 0x26a   :  { %v62_v15 = vadd.f32 %v61_v14, %v60_v13 }
 0x26c   :  { %v63_v16 = vrot.slane %v62_v15, 2 }
 0x26e   :  { %v64_v17 = vadd.f32 %v63_v16, %v62_v15 }
 0x270   :  { %v65_v18 = vrot.slane %v64_v17, 1 }
 0x272   :  { %v66_v19 = vadd.f32 %v65_v18, %v64_v17 }
 0x274   :  { %80 = vpush %v66_v19 }
 0x2a5   :  { %s81_s0 = spop %80 }
 0x2a6   :  { %v71_v22 = vstv %s81_s0 }
 0x2a7   :  { %v72_v23 = vsel %vm70_vm1, %v71_v22, 0.0 }
 0x2a8   :  { %73 = vst [vmem:[%s160_s2] sm:$0xff] %v72_v23 }
 0x2a9   :  { %78 = vsyncpa [#allocation3], 1 }
 0x2aa   :  { %79 = vsyncpa [#allocation5], 1 }

</bundles_post_ra>
